<compile_context>
chip_gen: v7x
topology: tpu7x:2x2x1
jax: 0.10.0
libtpu: 0.0.40
codegen_flags: <defaults>
</compile_context>

<pallas_src>
import functools

import jax
import jax.numpy as jnp
from jax import lax
from jax.experimental import pallas as pl
from jax.experimental.pallas import tpu as pltpu


# ----------------------------- Pallas kernels ------------------------------

def conv_pool_kernel(p_ref, w_ref, b_ref, o_ref, *, block_b, n_pool):
    """Fused conv (matmul over im2col taps) + bias + ReLU + 2x2 max-pool.

    p_ref: (1, K, block_b*4*n_pool)  im2col slab, lanes = (sample, phase, pos)
    w_ref: (Cout, K)                 conv weight, tap order (kh, kw, cin)
    b_ref: (Cout, 1)                 bias (f32)
    o_ref: (1, block_b, Cout, n_pool) pooled output, pos ordered (ho, wo)
    """
    # One MXU push covering every sample and all 4 pooling phases of the block.
    y = jnp.dot(w_ref[...], p_ref[0], preferred_element_type=jnp.float32)
    y = jnp.maximum(y + b_ref[...], 0.0)               # bias + ReLU (f32)
    # 2x2 max-pool == max over the 4 phase blocks (static lane slices).
    for s in range(block_b):
        base = s * 4 * n_pool
        pooled = y[:, base:base + n_pool]
        for j in range(1, 4):
            pooled = jnp.maximum(
                pooled, y[:, base + j * n_pool:base + (j + 1) * n_pool])
        o_ref[0, s] = pooled.astype(o_ref.dtype)


def linear_relu_kernel(x_ref, w_ref, b_ref, o_ref):
    """Linear(392 -> 128) + ReLU; 128-lane-dense output."""
    y = jnp.dot(x_ref[0], w_ref[...], preferred_element_type=jnp.float32)
    o_ref[0] = jnp.maximum(y + b_ref[...], 0.0).astype(o_ref.dtype)


# ------------------------------ pallas_call wrappers ------------------------

def conv_pool_call(slab, w_mat, bias, *, block_b, n_pool, out_dtype):
    nb, ktaps, lanes = slab.shape
    cout = w_mat.shape[0]
    kernel = functools.partial(conv_pool_kernel, block_b=block_b, n_pool=n_pool)
    return pl.pallas_call(
        kernel,
        out_shape=jax.ShapeDtypeStruct((nb, block_b, cout, n_pool), out_dtype),
        grid=(nb,),
        in_specs=[
            pl.BlockSpec((1, ktaps, lanes), lambda i: (i, 0, 0)),
            pl.BlockSpec((cout, ktaps), lambda i: (0, 0)),   # VMEM-resident
            pl.BlockSpec((cout, 1), lambda i: (0, 0)),       # VMEM-resident
        ],
        out_specs=pl.BlockSpec((1, block_b, cout, n_pool),
                               lambda i: (i, 0, 0, 0)),
        compiler_params=pltpu.CompilerParams(
            dimension_semantics=("parallel",),
            vmem_limit_bytes=32 * 1024 * 1024),
    )(slab, w_mat, bias)


def linear_call(feat, w_mat, bias, *, block_b):
    bt, kin = feat.shape
    nb = bt // block_b
    cout = w_mat.shape[1]
    x3 = feat.reshape(nb, block_b, kin)
    out = pl.pallas_call(
        linear_relu_kernel,
        out_shape=jax.ShapeDtypeStruct((nb, block_b, cout), jnp.float32),
        grid=(nb,),
        in_specs=[
            pl.BlockSpec((1, block_b, kin), lambda i: (i, 0, 0)),
            pl.BlockSpec((kin, cout), lambda i: (0, 0)),
            pl.BlockSpec((1, cout), lambda i: (0, 0)),
        ],
        out_specs=pl.BlockSpec((1, block_b, cout), lambda i: (i, 0, 0)),
        compiler_params=pltpu.CompilerParams(
            dimension_semantics=("parallel",),
            vmem_limit_bytes=32 * 1024 * 1024),
    )(x3, w_mat, bias)
    return out.reshape(bt, cout)


# ------------------------------- JAX glue -----------------------------------

def pick_block_b(bt_total):
    """Samples per grid step: big enough to amortize stepping, >=2 blocks so
    both v7x TensorCores get work when possible."""
    cap = max(1, bt_total // 2)
    for d in (8, 4, 2, 1):
        if d <= cap and bt_total % d == 0:
            return d
    return 1


def im2col_pool_slab(x_nhwc, k, pad, block_b, dtype):
    """(BT,H,W,Cin) -> (BT//block_b, k*k*Cin, block_b*4*(H//2)*(W//2)).

    Lane order inside a block: (sample, pool_phase, pooled_pos(ho,wo));
    tap (sublane) order: (kh, kw, cin) -- matches conv_weight_matrix below.
    """
    bt, h, w, c = x_nhwc.shape
    n = (h // 2) * (w // 2)
    xp = jnp.pad(x_nhwc, ((0, 0), (pad, pad), (pad, pad), (0, 0)))
    cols = jnp.concatenate(
        [xp[:, kh:kh + h, kw:kw + w, :] for kh in range(k) for kw in range(k)],
        axis=-1)                                        # (BT,H,W,k*k*Cin)
    phases = [cols[:, hp::2, wp::2, :].reshape(bt, n, k * k * c)
              for hp in range(2) for wp in range(2)]
    ph = jnp.stack(phases, axis=1)                      # (BT, 4, N, K)
    slab = ph.reshape(bt // block_b, block_b * 4 * n, k * k * c)
    return jnp.transpose(slab, (0, 2, 1)).astype(dtype)  # (NB, K, Bt*4*N)


def make_params(w1, b1, w2, b2, wl, bl, storage_dtype=jnp.float32):
    """PyTorch-layout params -> kernel-friendly matrices."""
    def conv_mat(w):  # (Cout,Cin,k,k) -> (Cout, k*k*Cin), col order (kh,kw,cin)
        return jnp.transpose(w, (0, 2, 3, 1)).reshape(w.shape[0], -1) \
                  .astype(storage_dtype)
    return dict(
        w1m=conv_mat(w1), b1=b1.reshape(-1, 1).astype(jnp.float32),
        w2m=conv_mat(w2), b2=b2.reshape(-1, 1).astype(jnp.float32),
        wlm=wl.T.astype(storage_dtype), bl=bl.reshape(1, -1).astype(jnp.float32),
        storage_dtype=storage_dtype,
    )


def forward_once(x_nchw, params, block_b):
    bt = x_nchw.shape[0]
    sdt = params["storage_dtype"]
    x = jnp.transpose(x_nchw, (0, 2, 3, 1))             # NCHW -> NHWC
    # stage 1: conv 3x3 pad1 (1->8) + ReLU + maxpool2 -> (BT, 8, 14, 14)
    s1 = im2col_pool_slab(x, 3, 1, block_b, sdt)        # (NB, 9, Bt*784)
    y1 = conv_pool_call(s1, params["w1m"], params["b1"],
                        block_b=block_b, n_pool=196, out_dtype=sdt)
    x1 = jnp.transpose(y1.reshape(bt, 8, 14, 14), (0, 2, 3, 1))   # NHWC
    # stage 2: conv 5x5 pad2 (8->8) + ReLU + maxpool2 -> (BT, 8, 7, 7)
    s2 = im2col_pool_slab(x1, 5, 2, block_b, sdt)       # (NB, 200, Bt*196)
    y2 = conv_pool_call(s2, params["w2m"], params["b2"],
                        block_b=block_b, n_pool=49, out_dtype=sdt)
    # flatten in PyTorch NCHW order: index = c*49 + h*7 + w
    feat = y2.reshape(bt, 392)
    # stage 3: Linear(392,128) + ReLU
    return linear_call(feat, params["wlm"], params["bl"], block_b=block_b)


def fnet_forward(input1, input2, params, block_b=None):
    b = input1.shape[0]
    x = jnp.concatenate([input1, input2], axis=0)       # merge siamese branches
    if block_b is None:
        block_b = pick_block_b(2 * b)
    out = forward_once(x, params, block_b)
    return out[:b], out[b:]


# ------------------------- pure-JAX reference (check) ------------------------

def ref_forward_once(x, w1, b1, w2, b2, wl, bl):
    def conv(x, w, b, pad):
        y = lax.conv_general_dilated(
            x, w, window_strides=(1, 1), padding=((pad, pad), (pad, pad)),
            dimension_numbers=("NCHW", "OIHW", "NCHW"))
        return y + b.reshape(1, -1, 1, 1)

    def pool(x):
        return lax.reduce_window(x, -jnp.inf, lax.max,
                                 (1, 1, 2, 2), (1, 1, 2, 2), "VALID")

    y = pool(jnp.maximum(conv(x, w1, b1, 1), 0.0))
    y = pool(jnp.maximum(conv(y, w2, b2, 2), 0.0))
    y = y.reshape(y.shape[0], -1)
    return jnp.maximum(y @ wl.T + bl, 0.0)


# ---------------------------------- main -------------------------------------

if __name__ == "__main__":
    key = jax.random.PRNGKey(0)
    ks = jax.random.split(key, 8)
    B = 2

    input1 = jax.random.normal(ks[0], (B, 1, 28, 28), jnp.float32)
    input2 = jax.random.normal(ks[1], (B, 1, 28, 28), jnp.float32)

    # deterministic synthetic parameters (PyTorch layouts)
    w1 = 0.10 * jax.random.normal(ks[2], (8, 1, 3, 3), jnp.float32)
    b1 = 0.10 * jax.random.normal(ks[3], (8,), jnp.float32)
    w2 = 0.05 * jax.random.normal(ks[4], (8, 8, 5, 5), jnp.float32)
    b2 = 0.05 * jax.random.normal(ks[5], (8,), jnp.float32)
    wl = 0.05 * jax.random.normal(ks[6], (128, 392), jnp.float32)
    bl = 0.05 * jax.random.normal(ks[7], (128,), jnp.float32)

    # Pass storage_dtype=jnp.bfloat16 on v6e/v7x to halve HBM traffic
    # (accumulation stays f32); f32 default keeps the numerics check tight.
    params = make_params(w1, b1, w2, b2, wl, bl, storage_dtype=jnp.float32)

    fwd = jax.jit(lambda a, b: fnet_forward(a, b, params))
    out1, out2 = jax.block_until_ready(fwd(input1, input2))

    assert out1.shape == (B, 128) and out2.shape == (B, 128)
    ref1 = ref_forward_once(input1, w1, b1, w2, b2, wl, bl)
    ref2 = ref_forward_once(input2, w1, b1, w2, b2, wl, bl)
    assert jnp.allclose(out1, ref1, atol=2e-3, rtol=2e-2)
    assert jnp.allclose(out2, ref2, atol=2e-3, rtol=2e-2)

    print("KERNEL_OK")
</pallas_src>

<mosaic_0001>
module attributes {stable_mosaic.version = 11 : i64} {
  func.func @conv_pool_kernel(%arg0: i32, %arg1: memref<1x9x1568xf32, #tpu.memory_space<vmem>>, %arg2: memref<8x9xf32, #tpu.memory_space<vmem>>, %arg3: memref<8x1xf32, #tpu.memory_space<vmem>>, %arg4: memref<1x2x8x196xf32, #tpu.memory_space<vmem>>) attributes {dimension_semantics = [#tpu.dimension_semantics<parallel>], iteration_bounds = array<i64: 2>, scalar_prefetch = 0 : i64, scratch_operands = 0 : i64, tpu.core_type = #tpu.core_type<tc>, window_params = [{transform_indices = @transform_0, window_bounds = array<i64: 1, 9, 1568>}, {pipeline_mode = #tpu.pipeline_mode<synchronous>, transform_indices = @transform_1, window_bounds = array<i64: 8, 9>}, {pipeline_mode = #tpu.pipeline_mode<synchronous>, transform_indices = @transform_2, window_bounds = array<i64: 8, 1>}, {transform_indices = @transform_3, window_bounds = array<i64: 1, 2, 8, 196>}]} {
    %c0 = arith.constant 0 : index
    %c0_0 = arith.constant 0 : index
    %0 = vector.load %arg2[%c0, %c0_0] : memref<8x9xf32, #tpu.memory_space<vmem>>, vector<8x9xf32>
    %c0_1 = arith.constant 0 : index
    %c0_2 = arith.constant 0 : index
    %c0_3 = arith.constant 0 : index
    %1 = vector.load %arg1[%c0_1, %c0_2, %c0_3] : memref<1x9x1568xf32, #tpu.memory_space<vmem>>, vector<1x9x1568xf32>
    %2 = vector.shape_cast %1 : vector<1x9x1568xf32> to vector<9x1568xf32>
    %cst = arith.constant dense<0.000000e+00> : vector<8x1568xf32>
    %3 = tpu.matmul %0, %2, %cst {dimension_numbers = #tpu.dot_dimension_numbers<[1], [0], [0], [1], [0, 0, 1, 1], [], []>} : vector<8x9xf32>, vector<9x1568xf32>, vector<8x1568xf32> -> vector<8x1568xf32>
    %c0_4 = arith.constant 0 : index
    %c0_5 = arith.constant 0 : index
    %4 = vector.load %arg3[%c0_4, %c0_5] : memref<8x1xf32, #tpu.memory_space<vmem>>, vector<8x1xf32>
    %5 = vector.broadcast %4 : vector<8x1xf32> to vector<8x1568xf32>
    %6 = arith.addf %3, %5 : vector<8x1568xf32>
    %cst_6 = arith.constant 0.000000e+00 : f32
    %7 = vector.broadcast %cst_6 : f32 to vector<8x1568xf32>
    %8 = arith.maximumf %6, %7 : vector<8x1568xf32>
    %9 = vector.extract_strided_slice %8 {offsets = [0, 0], sizes = [8, 196], strides = [1, 1]} : vector<8x1568xf32> to vector<8x196xf32>
    %10 = vector.extract_strided_slice %8 {offsets = [0, 196], sizes = [8, 196], strides = [1, 1]} : vector<8x1568xf32> to vector<8x196xf32>
    %11 = arith.maximumf %9, %10 : vector<8x196xf32>
    %12 = vector.extract_strided_slice %8 {offsets = [0, 392], sizes = [8, 196], strides = [1, 1]} : vector<8x1568xf32> to vector<8x196xf32>
    %13 = arith.maximumf %11, %12 : vector<8x196xf32>
    %14 = vector.extract_strided_slice %8 {offsets = [0, 588], sizes = [8, 196], strides = [1, 1]} : vector<8x1568xf32> to vector<8x196xf32>
    %15 = arith.maximumf %13, %14 : vector<8x196xf32>
    %c0_7 = arith.constant 0 : index
    %c0_8 = arith.constant 0 : index
    %c0_9 = arith.constant 0 : index
    %c0_10 = arith.constant 0 : index
    %16 = vector.load %arg4[%c0_7, %c0_8, %c0_9, %c0_10] : memref<1x2x8x196xf32, #tpu.memory_space<vmem>>, vector<1x1x8x196xf32>
    %17 = vector.shape_cast %16 : vector<1x1x8x196xf32> to vector<8x196xf32>
    %18 = vector.shape_cast %15 : vector<8x196xf32> to vector<1x1x8x196xf32>
    tpu.vector_store %arg4[%c0_7, %c0_8, %c0_9, %c0_10], %18 {strides = array<i32>} : memref<1x2x8x196xf32, #tpu.memory_space<vmem>>, vector<1x1x8x196xf32>,
    %19 = vector.extract_strided_slice %8 {offsets = [0, 784], sizes = [8, 196], strides = [1, 1]} : vector<8x1568xf32> to vector<8x196xf32>
    %20 = vector.extract_strided_slice %8 {offsets = [0, 980], sizes = [8, 196], strides = [1, 1]} : vector<8x1568xf32> to vector<8x196xf32>
    %21 = arith.maximumf %19, %20 : vector<8x196xf32>
    %22 = vector.extract_strided_slice %8 {offsets = [0, 1176], sizes = [8, 196], strides = [1, 1]} : vector<8x1568xf32> to vector<8x196xf32>
    %23 = arith.maximumf %21, %22 : vector<8x196xf32>
    %24 = vector.extract_strided_slice %8 {offsets = [0, 1372], sizes = [8, 196], strides = [1, 1]} : vector<8x1568xf32> to vector<8x196xf32>
    %25 = arith.maximumf %23, %24 : vector<8x196xf32>
    %c0_11 = arith.constant 0 : index
    %c1 = arith.constant 1 : index
    %c0_12 = arith.constant 0 : index
    %c0_13 = arith.constant 0 : index
    %26 = vector.load %arg4[%c0_11, %c1, %c0_12, %c0_13] : memref<1x2x8x196xf32, #tpu.memory_space<vmem>>, vector<1x1x8x196xf32>
    %27 = vector.shape_cast %26 : vector<1x1x8x196xf32> to vector<8x196xf32>
    %28 = vector.shape_cast %25 : vector<8x196xf32> to vector<1x1x8x196xf32>
    tpu.vector_store %arg4[%c0_11, %c1, %c0_12, %c0_13], %28 {strides = array<i32>} : memref<1x2x8x196xf32, #tpu.memory_space<vmem>>, vector<1x1x8x196xf32>,
    return
  }
  func.func @transform_0(%arg0: i32) -> (i32, i32, i32) {
    %c0_i32 = arith.constant 0 : i32
    %c0_i32_0 = arith.constant 0 : i32
    %c0_i32_1 = arith.constant 0 : i32
    return %arg0, %c0_i32, %c0_i32_0 : i32, i32, i32
  }
  func.func @transform_1(%arg0: i32) -> (i32, i32) {
    %c0_i32 = arith.constant 0 : i32
    %c0_i32_0 = arith.constant 0 : i32
    %c0_i32_1 = arith.constant 0 : i32
    return %c0_i32, %c0_i32_0 : i32, i32
  }
  func.func @transform_2(%arg0: i32) -> (i32, i32) {
    %c0_i32 = arith.constant 0 : i32
    %c0_i32_0 = arith.constant 0 : i32
    %c0_i32_1 = arith.constant 0 : i32
    return %c0_i32, %c0_i32_0 : i32, i32
  }
  func.func @transform_3(%arg0: i32) -> (i32, i32, i32, i32) {
    %c0_i32 = arith.constant 0 : i32
    %c0_i32_0 = arith.constant 0 : i32
    %c0_i32_1 = arith.constant 0 : i32
    %c0_i32_2 = arith.constant 0 : i32
    return %arg0, %c0_i32, %c0_i32_0, %c0_i32_1 : i32, i32, i32, i32
  }
}

module attributes {stable_mosaic.version = 11 : i64} {
  func.func @conv_pool_kernel(%arg0: i32, %arg1: memref<1x200x392xf32, #tpu.memory_space<vmem>>, %arg2: memref<8x200xf32, #tpu.memory_space<vmem>>, %arg3: memref<8x1xf32, #tpu.memory_space<vmem>>, %arg4: memref<1x2x8x49xf32, #tpu.memory_space<vmem>>) attributes {dimension_semantics = [#tpu.dimension_semantics<parallel>], iteration_bounds = array<i64: 2>, scalar_prefetch = 0 : i64, scratch_operands = 0 : i64, tpu.core_type = #tpu.core_type<tc>, window_params = [{transform_indices = @transform_0, window_bounds = array<i64: 1, 200, 392>}, {pipeline_mode = #tpu.pipeline_mode<synchronous>, transform_indices = @transform_1, window_bounds = array<i64: 8, 200>}, {pipeline_mode = #tpu.pipeline_mode<synchronous>, transform_indices = @transform_2, window_bounds = array<i64: 8, 1>}, {transform_indices = @transform_3, window_bounds = array<i64: 1, 2, 8, 49>}]} {
    %c0 = arith.constant 0 : index
    %c0_0 = arith.constant 0 : index
    %0 = vector.load %arg2[%c0, %c0_0] : memref<8x200xf32, #tpu.memory_space<vmem>>, vector<8x200xf32>
    %c0_1 = arith.constant 0 : index
    %c0_2 = arith.constant 0 : index
    %c0_3 = arith.constant 0 : index
    %1 = vector.load %arg1[%c0_1, %c0_2, %c0_3] : memref<1x200x392xf32, #tpu.memory_space<vmem>>, vector<1x200x392xf32>
    %2 = vector.shape_cast %1 : vector<1x200x392xf32> to vector<200x392xf32>
    %cst = arith.constant dense<0.000000e+00> : vector<8x392xf32>
    %3 = tpu.matmul %0, %2, %cst {dimension_numbers = #tpu.dot_dimension_numbers<[1], [0], [0], [1], [0, 0, 1, 1], [], []>} : vector<8x200xf32>, vector<200x392xf32>, vector<8x392xf32> -> vector<8x392xf32>
    %c0_4 = arith.constant 0 : index
    %c0_5 = arith.constant 0 : index
    %4 = vector.load %arg3[%c0_4, %c0_5] : memref<8x1xf32, #tpu.memory_space<vmem>>, vector<8x1xf32>
    %5 = vector.broadcast %4 : vector<8x1xf32> to vector<8x392xf32>
    %6 = arith.addf %3, %5 : vector<8x392xf32>
    %cst_6 = arith.constant 0.000000e+00 : f32
    %7 = vector.broadcast %cst_6 : f32 to vector<8x392xf32>
    %8 = arith.maximumf %6, %7 : vector<8x392xf32>
    %9 = vector.extract_strided_slice %8 {offsets = [0, 0], sizes = [8, 49], strides = [1, 1]} : vector<8x392xf32> to vector<8x49xf32>
    %10 = vector.extract_strided_slice %8 {offsets = [0, 49], sizes = [8, 49], strides = [1, 1]} : vector<8x392xf32> to vector<8x49xf32>
    %11 = arith.maximumf %9, %10 : vector<8x49xf32>
    %12 = vector.extract_strided_slice %8 {offsets = [0, 98], sizes = [8, 49], strides = [1, 1]} : vector<8x392xf32> to vector<8x49xf32>
    %13 = arith.maximumf %11, %12 : vector<8x49xf32>
    %14 = vector.extract_strided_slice %8 {offsets = [0, 147], sizes = [8, 49], strides = [1, 1]} : vector<8x392xf32> to vector<8x49xf32>
    %15 = arith.maximumf %13, %14 : vector<8x49xf32>
    %c0_7 = arith.constant 0 : index
    %c0_8 = arith.constant 0 : index
    %c0_9 = arith.constant 0 : index
    %c0_10 = arith.constant 0 : index
    %16 = vector.load %arg4[%c0_7, %c0_8, %c0_9, %c0_10] : memref<1x2x8x49xf32, #tpu.memory_space<vmem>>, vector<1x1x8x49xf32>
    %17 = vector.shape_cast %16 : vector<1x1x8x49xf32> to vector<8x49xf32>
    %18 = vector.shape_cast %15 : vector<8x49xf32> to vector<1x1x8x49xf32>
    tpu.vector_store %arg4[%c0_7, %c0_8, %c0_9, %c0_10], %18 {strides = array<i32>} : memref<1x2x8x49xf32, #tpu.memory_space<vmem>>, vector<1x1x8x49xf32>,
    %19 = vector.extract_strided_slice %8 {offsets = [0, 196], sizes = [8, 49], strides = [1, 1]} : vector<8x392xf32> to vector<8x49xf32>
    %20 = vector.extract_strided_slice %8 {offsets = [0, 245], sizes = [8, 49], strides = [1, 1]} : vector<8x392xf32> to vector<8x49xf32>
    %21 = arith.maximumf %19, %20 : vector<8x49xf32>
    %22 = vector.extract_strided_slice %8 {offsets = [0, 294], sizes = [8, 49], strides = [1, 1]} : vector<8x392xf32> to vector<8x49xf32>
    %23 = arith.maximumf %21, %22 : vector<8x49xf32>
    %24 = vector.extract_strided_slice %8 {offsets = [0, 343], sizes = [8, 49], strides = [1, 1]} : vector<8x392xf32> to vector<8x49xf32>
    %25 = arith.maximumf %23, %24 : vector<8x49xf32>
    %c0_11 = arith.constant 0 : index
    %c1 = arith.constant 1 : index
    %c0_12 = arith.constant 0 : index
    %c0_13 = arith.constant 0 : index
    %26 = vector.load %arg4[%c0_11, %c1, %c0_12, %c0_13] : memref<1x2x8x49xf32, #tpu.memory_space<vmem>>, vector<1x1x8x49xf32>
    %27 = vector.shape_cast %26 : vector<1x1x8x49xf32> to vector<8x49xf32>
    %28 = vector.shape_cast %25 : vector<8x49xf32> to vector<1x1x8x49xf32>
    tpu.vector_store %arg4[%c0_11, %c1, %c0_12, %c0_13], %28 {strides = array<i32>} : memref<1x2x8x49xf32, #tpu.memory_space<vmem>>, vector<1x1x8x49xf32>,
    return
  }
  func.func @transform_0(%arg0: i32) -> (i32, i32, i32) {
    %c0_i32 = arith.constant 0 : i32
    %c0_i32_0 = arith.constant 0 : i32
    %c0_i32_1 = arith.constant 0 : i32
    return %arg0, %c0_i32, %c0_i32_0 : i32, i32, i32
  }
  func.func @transform_1(%arg0: i32) -> (i32, i32) {
    %c0_i32 = arith.constant 0 : i32
    %c0_i32_0 = arith.constant 0 : i32
    %c0_i32_1 = arith.constant 0 : i32
    return %c0_i32, %c0_i32_0 : i32, i32
  }
  func.func @transform_2(%arg0: i32) -> (i32, i32) {
    %c0_i32 = arith.constant 0 : i32
    %c0_i32_0 = arith.constant 0 : i32
    %c0_i32_1 = arith.constant 0 : i32
    return %c0_i32, %c0_i32_0 : i32, i32
  }
  func.func @transform_3(%arg0: i32) -> (i32, i32, i32, i32) {
    %c0_i32 = arith.constant 0 : i32
    %c0_i32_0 = arith.constant 0 : i32
    %c0_i32_1 = arith.constant 0 : i32
    %c0_i32_2 = arith.constant 0 : i32
    return %arg0, %c0_i32, %c0_i32_0, %c0_i32_1 : i32, i32, i32, i32
  }
}

module attributes {stable_mosaic.version = 11 : i64} {
  func.func @linear_relu_kernel(%arg0: i32, %arg1: memref<1x2x392xf32, #tpu.memory_space<vmem>>, %arg2: memref<392x128xf32, #tpu.memory_space<vmem>>, %arg3: memref<1x128xf32, #tpu.memory_space<vmem>>, %arg4: memref<1x2x128xf32, #tpu.memory_space<vmem>>) attributes {dimension_semantics = [#tpu.dimension_semantics<parallel>], iteration_bounds = array<i64: 2>, scalar_prefetch = 0 : i64, scratch_operands = 0 : i64, tpu.core_type = #tpu.core_type<tc>, window_params = [{transform_indices = @transform_0, window_bounds = array<i64: 1, 2, 392>}, {pipeline_mode = #tpu.pipeline_mode<synchronous>, transform_indices = @transform_1, window_bounds = array<i64: 392, 128>}, {pipeline_mode = #tpu.pipeline_mode<synchronous>, transform_indices = @transform_2, window_bounds = array<i64: 1, 128>}, {transform_indices = @transform_3, window_bounds = array<i64: 1, 2, 128>}]} {
    %c0 = arith.constant 0 : index
    %c0_0 = arith.constant 0 : index
    %c0_1 = arith.constant 0 : index
    %0 = vector.load %arg1[%c0, %c0_0, %c0_1] : memref<1x2x392xf32, #tpu.memory_space<vmem>>, vector<1x2x392xf32>
    %1 = vector.shape_cast %0 : vector<1x2x392xf32> to vector<2x392xf32>
    %c0_2 = arith.constant 0 : index
    %c0_3 = arith.constant 0 : index
    %2 = vector.load %arg2[%c0_2, %c0_3] : memref<392x128xf32, #tpu.memory_space<vmem>>, vector<392x128xf32>
    %cst = arith.constant dense<0.000000e+00> : vector<2x128xf32>
    %3 = tpu.matmul %1, %2, %cst {dimension_numbers = #tpu.dot_dimension_numbers<[1], [0], [0], [1], [0, 0, 1, 1], [], []>} : vector<2x392xf32>, vector<392x128xf32>, vector<2x128xf32> -> vector<2x128xf32>
    %c0_4 = arith.constant 0 : index
    %c0_5 = arith.constant 0 : index
    %4 = vector.load %arg3[%c0_4, %c0_5] : memref<1x128xf32, #tpu.memory_space<vmem>>, vector<1x128xf32>
    %5 = vector.broadcast %4 : vector<1x128xf32> to vector<2x128xf32>
    %6 = arith.addf %3, %5 : vector<2x128xf32>
    %cst_6 = arith.constant 0.000000e+00 : f32
    %7 = vector.broadcast %cst_6 : f32 to vector<2x128xf32>
    %8 = arith.maximumf %6, %7 : vector<2x128xf32>
    %c0_7 = arith.constant 0 : index
    %c0_8 = arith.constant 0 : index
    %c0_9 = arith.constant 0 : index
    %9 = vector.load %arg4[%c0_7, %c0_8, %c0_9] : memref<1x2x128xf32, #tpu.memory_space<vmem>>, vector<1x2x128xf32>
    %10 = vector.shape_cast %9 : vector<1x2x128xf32> to vector<2x128xf32>
    %11 = vector.shape_cast %8 : vector<2x128xf32> to vector<1x2x128xf32>
    tpu.vector_store %arg4[%c0_7, %c0_8, %c0_9], %11 {strides = array<i32>} : memref<1x2x128xf32, #tpu.memory_space<vmem>>, vector<1x2x128xf32>,
    return
  }
  func.func @transform_0(%arg0: i32) -> (i32, i32, i32) {
    %c0_i32 = arith.constant 0 : i32
    %c0_i32_0 = arith.constant 0 : i32
    %c0_i32_1 = arith.constant 0 : i32
    return %arg0, %c0_i32, %c0_i32_0 : i32, i32, i32
  }
  func.func @transform_1(%arg0: i32) -> (i32, i32) {
    %c0_i32 = arith.constant 0 : i32
    %c0_i32_0 = arith.constant 0 : i32
    %c0_i32_1 = arith.constant 0 : i32
    return %c0_i32, %c0_i32_0 : i32, i32
  }
  func.func @transform_2(%arg0: i32) -> (i32, i32) {
    %c0_i32 = arith.constant 0 : i32
    %c0_i32_0 = arith.constant 0 : i32
    %c0_i32_1 = arith.constant 0 : i32
    return %c0_i32, %c0_i32_0 : i32, i32
  }
  func.func @transform_3(%arg0: i32) -> (i32, i32, i32) {
    %c0_i32 = arith.constant 0 : i32
    %c0_i32_0 = arith.constant 0 : i32
    %c0_i32_1 = arith.constant 0 : i32
    return %arg0, %c0_i32, %c0_i32_0 : i32, i32, i32
  }
}

</mosaic_0001>

<bundles_post_ra>
// kernel: _lambda_.3
= control target key start
LH: loop header
LB: loop body
LE: loop exit
PB: predicated region body
PF: predicated region fallthrough
CT: control target
= control target key end

     0   :  { %s1048_s12 = smov 0   ;;  %s1187_s0 = inlined_call_operand.vmem [shape: f32[2,9,1568], index: 0, kind: input, shape index: {}]   ;;  %s1188_s1 = inlined_call_operand.vmem [shape: f32[8,9], index: 1, kind: input, shape index: {}]   ;;  %s1189_s2 = inlined_call_operand.vmem [shape: f32[8,1], index: 2, kind: input, shape index: {}]   ;;  %s1190_s3 = inlined_call_operand.vmem [shape: f32[2,2,8,196], index: 3, kind: output, shape index: {}]  }
   0x1 LB: > { %s909_s13 = sadd.s32 4294967295, %s1017_s12   ;;  %p913_p0 = scmp.ge.s32.totalorder %s1017_s12, 1  ;;  %s1017_s12 = sphi %s1048_s12, %s13_s12  }
   0x2   : > { %p137_p1 = scmp.lt.s32.totalorder %s1017_s12, 3 }
   0x4   : > { %p138_p2 = pnand %p913_p0, %p137_p1 }
   0x5   : > { %p161_p3 = scmp.lt.s32.totalorder (!%p138_p2), %s909_s13, 1  ;;  %v1019_v0 = vmov (!%p138_p2), 0.0   ;;  %v198_v1 = vld [vmem:[%s1189_s2] sm:$0xff] (!%p138_p2)  ;;  %v1020_v2 = vmov (!%p138_p2), 0   ;;  %vm208_vm0 = vcmask (!%p138_p2), 1040384   ;;  %vm1021_vm1 = vmmov (!%p138_p2), 1  }
   0x6   : > { %141 = sbr.rel (%p138_p2) target bundleno = 496 (0x1f0), region = 32  ;;  %312 = vmatprep.mubr.f32.mxu0 (!%p138_p2), %v1019_v0  ;;  %383 = vmatprep.mubr.f32.mxu1 (!%p138_p2), %v1019_v0  ;;  %vm1069_vm2 = vmpackc.low (!%p138_p2), %vm208_vm0, %vm1021_vm1  ;;  %v171_v15 = vld [vmem:[%s1188_s1] sm:$0xff] (!%p138_p2)  ;;  %vm204_vm3 = vcmask (!%p138_p2), 72704   ;;  %v1022_v44 = vmov (!%p138_p2), 0.0|0.0   ;;  %vm1023_vm4 = vmmov (!%p138_p2), 0   ;;  %s1024_s22 = smov (!%p138_p2), 60  }
   0x7   : > { %1010 = vset.pattern.permute.xlu0 (!%p138_p2), %v1020_v2  ;;  %s1025_s23 = smov (!%p138_p2), 52   ;;  %s1026_s24 = smov (!%p138_p2), 120   ;;  %vm766_vm5 = vcmask (!%p138_p2), 490496   ;;  %vm778_vm6 = vcmask (!%p138_p2), 982016   ;;  %vm792_vm7 = vcmask (!%p138_p2), 424960   ;;  %vm800_vm8 = vcmask (!%p138_p2), 556032  }
   0x8   : > { %201 = vperm.xlu0 (!%p138_p2), %1010, %v198_v1   ;;  %s1027_s25 = smov (!%p138_p2), 112   ;;  %vm847_vm9 = vcmask (!%p138_p2), 916480  }
   0xd   : > { %s1194_s13 = smov (!%p161_p3, %s909_s13), 1 }
   0xe   : > { %s992_s16 = smul.u32 208, %s1194_s13  ;;  %s941_s26 = sshll.u32 %s1194_s13, 5 }
   0xf   : > { %s170_s29 = scalar_lea.vmem %s1190_s3, %s941_s26 }
  0x10   : > { %s1067_s19 = scalar_lea.vmem %s1187_s0, %s992_s16 }
  0x11   : > { %v173_v4 = vld [vmem:[%s1067_s19 + $0x8] sm:$0xff]  ;;  %v186_v5 = vld [vmem:[%s1067_s19 + $0x70] sm:$0x1]  ;;  %v175_v6 = vld [vmem:[%s1067_s19 + $0x18] sm:$0xff] }
  0x12   : > { %v952_v7 = vpack.c.bf16 %v186_v5, %v173_v4  ;;  %v188_v8 = vld [vmem:[%s1067_s19 + $0x80] sm:$0x1]  ;;  %v185_v10 = vld [vmem:[%s1067_s19 + $0x68] sm:$0x1]  ;;  %v174_v13 = vld [vmem:[%s1067_s19 + $0x10] sm:$0xff] }
  0x13   : > { %v172_v9 = vld [vmem:[%s1067_s19] sm:$0xff]  ;;  %v958_v11 = vpack.c.bf16 %v188_v8, %v175_v6  ;;  %v187_v14 = vld [vmem:[%s1067_s19 + $0x78] sm:$0x1]  ;;  %v177_v16 = vld [vmem:[%s1067_s19 + $0x28] sm:$0xff] }
  0x14   : > { %v955_v12 = vpack.c.bf16 %v185_v10, %v172_v9  ;;  %954 = vmatprep.subr.msk.bf16.mxu0 %vm1069_vm2, %v952_v7  ;;  %v961_v17 = vpack.c.bf16 %v187_v14, %v174_v13  ;;  %v190_v18 = vld [vmem:[%s1067_s19 + $0x90] sm:$0x1]  ;;  %v179_v19 = vld [vmem:[%s1067_s19 + $0x38] sm:$0xff]  ;;  %v192_v20 = vld [vmem:[%s1067_s19 + $0xa0] sm:$0x1] }
  0x15   : > { %960 = vmatprep.subr.msk.bf16.mxu1 %vm1069_vm2, %v958_v11  ;;  %v964_v21 = vpack.c.bf16 %v190_v18, %v177_v16  ;;  %v970_v22 = vpack.c.bf16 %v192_v20, %v179_v19  ;;  %v176_v23 = vld [vmem:[%s1067_s19 + $0x20] sm:$0xff]  ;;  %v189_v24 = vld [vmem:[%s1067_s19 + $0x88] sm:$0x1]  ;;  %v178_v25 = vld [vmem:[%s1067_s19 + $0x30] sm:$0xff] }
  0x16   : > { %957 = vmatpush1.bf16.msk.msra.mxu0 %vm1069_vm2, %v955_v12  ;;  %963 = vmatpush1.bf16.msk.msra.mxu1 %vm1069_vm2, %v961_v17  ;;  %v967_v26 = vpack.c.bf16 %v189_v24, %v176_v23  ;;  %v191_v27 = vld [vmem:[%s1067_s19 + $0x98] sm:$0x1]  ;;  %v181_v28 = vld [vmem:[%s1067_s19 + $0x48] sm:$0xff]  ;;  %v194_v29 = vld [vmem:[%s1067_s19 + $0xb0] sm:$0x1] }
  0x17   : > { %966 = vmatprep.subr.msk.bf16.mxu0 %vm1069_vm2, %v964_v21  ;;  %972 = vmatprep.subr.msk.bf16.mxu1 %vm1069_vm2, %v970_v22  ;;  %v973_v30 = vpack.c.bf16 %v191_v27, %v178_v25  ;;  %v976_v31 = vpack.c.bf16 %v194_v29, %v181_v28  ;;  %v183_v32 = vld [vmem:[%s1067_s19 + $0x58] sm:$0xff]  ;;  %v196_v33 = vld [vmem:[%s1067_s19 + $0xc0] sm:$0x1]  ;;  %v193_v36 = vld [vmem:[%s1067_s19 + $0xa8] sm:$0x1] }
  0x18   : > { %v180_v34 = vld [vmem:[%s1067_s19 + $0x40] sm:$0xff]  ;;  %v982_v35 = vpack.c.bf16 %v196_v33, %v183_v32  ;;  %v182_v37 = vld [vmem:[%s1067_s19 + $0x50] sm:$0xff]  ;;  %v195_v38 = vld [vmem:[%s1067_s19 + $0xb8] sm:$0x1] }
  0x19   : > { %919 = vmatmul.mubr.msk.f32.vlgmr.msra.gmra.mrb[0].mxu0 %vm204_vm3, %v171_v15  ;;  %922 = vmatmul.mubr.msk.f32.vlgmr.msra.gmra.mrb[0].mxu1 %vm204_vm3, %v171_v15  ;;  %v979_v39 = vpack.c.bf16 %v193_v36, %v180_v34  ;;  %v985_v40 = vpack.c.bf16 %v195_v38, %v182_v37  ;;  %v184_v41 = vld [vmem:[%s1067_s19 + $0x60] sm:$0xff]  ;;  %v197_v42 = vld [vmem:[%s1067_s19 + $0xc8] sm:$0x1] }
  0x1a   : > { %969 = vmatpush1.bf16.msk.msra.mxu0 %vm1069_vm2, %v967_v26  ;;  %975 = vmatpush1.bf16.msk.msra.mxu1 %vm1069_vm2, %v973_v30  ;;  %v989_v43 = vpack.c.bf16 %v197_v42, %v184_v41 }
  0x1b   : > { %454 = vmatprep.mubr.f32.mxu0 %v1019_v0  ;;  %525 = vmatprep.mubr.f32.mxu1 %v1019_v0 }
  0x1c   : > { %978 = vmatprep.subr.msk.bf16.mxu0 %vm1069_vm2, %v976_v31  ;;  %984 = vmatprep.subr.msk.bf16.mxu1 %vm1069_vm2, %v982_v35 }
  0x1d   : > { %925 = vmatmul.mubr.msk.f32.vlgmr.msra.gmra.mrb[2].mxu0 %vm204_vm3, %v171_v15  ;;  %928 = vmatmul.mubr.msk.f32.vlgmr.msra.gmra.mrb[2].mxu1 %vm204_vm3, %v171_v15 }
  0x1e   : > { %981 = vmatpush1.bf16.msk.msra.mxu0 %vm1069_vm2, %v979_v39  ;;  %987 = vmatpush1.bf16.msk.msra.mxu1 %vm1069_vm2, %v985_v40 }
  0x1f   : > { %596 = vmatprep.mubr.f32.mxu0 %v1019_v0  ;;  %667 = vmatprep.mubr.f32.mxu1 %v1019_v0 }
  0x20   : > { %988 = vmatprep.subr.bf16.mxu0 %v1022_v44 }
  0x21   : > { %931 = vmatmul.mubr.msk.f32.vlgmr.msra.gmra.mrb[4].mxu0 %vm204_vm3, %v171_v15  ;;  %934 = vmatmul.mubr.msk.f32.vlgmr.msra.gmra.mrb[4].mxu1 %vm204_vm3, %v171_v15 }
  0x22   : > { %991 = vmatpush3.bf16.msk.msra.mxu0 %vm1069_vm2, %v989_v43  ;;  %949 = vmatprep.mubr.msk.f32.mxu0 %vm1023_vm4, %v1019_v0 }
  0x25   : > { %950 = vmatmul.mubr.msk.f32.vlgmr.msra.gmra.mrb[6].mxu0 %vm204_vm3, %v171_v15 }
  0x87   : > { %v1142_v52 = vpop.permute.xlu0 %201 }
  0xec   : > { %v1140_v45 = vpop.f32.mrb[0].mxu0  ;;  %v385_v47 = vpop.f32.mrb[0].mxu1 }
  0xed   : > { %v316_v46 = vpop.f32.mrb[1].mxu0  ;;  %v387_v48 = vpop.f32.mrb[1].mxu1  ;;  %v386_v6 = vadd.f32 %v385_v47, %v1142_v52  ;;  %v315_v42 = vadd.f32 %v1140_v45, %v1142_v52 }
  0xee   : > { %v317_v8 = vadd.f32 %v316_v46, %v1142_v52  ;;  %v388_v11 = vadd.f32 %v387_v48, %v1142_v52 }
  0xef   : > { %v746_v10 = vmax.f32 %v386_v6, 0.0  ;;  %v744_v48 = vmax.f32 %v315_v42, 0.0 }
  0xf0   : > { %v456_v49 = vpop.f32.mrb[2].mxu0  ;;  %v527_v50 = vpop.f32.mrb[2].mxu1  ;;  %v745_v12 = vmax.f32 %v317_v8, 0.0  ;;  %v747_v13 = vmax.f32 %v388_v11, 0.0 }
  0xf1   : > { %v458_v51 = vpop.f32.mrb[3].mxu0  ;;  %v529_v53 = vpop.f32.mrb[3].mxu1  ;;  %v457_v14 = vadd.f32 %v456_v49, %v1142_v52  ;;  %v528_v16 = vadd.f32 %v527_v50, %v1142_v52 }
  0xf2   : > { %v530_v54 = vadd.f32 %v529_v53, %v1142_v52  ;;  %v459_v17 = vadd.f32 %v458_v51, %v1142_v52 }
  0xf3   : > { %v748_v15 = vmax.f32 %v457_v14, 0.0  ;;  %v750_v18 = vmax.f32 %v528_v16, 0.0 }
  0xf4   : > { %v598_v55 = vpop.f32.mrb[4].mxu0  ;;  %v751_v56 = vmax.f32 %v530_v54, 0.0  ;;  %v669_v58 = vpop.f32.mrb[4].mxu1  ;;  %v749_v19 = vmax.f32 %v459_v17, 0.0 }
  0xf5   : > { %v599_v57 = vadd.f32 %v598_v55, %v1142_v52  ;;  %v600_v59 = vpop.f32.mrb[5].mxu0  ;;  %v670_v60 = vadd.f32 %v669_v58, %v1142_v52  ;;  %v671_v61 = vpop.f32.mrb[5].mxu1 }
  0xf6   : > { %805 = vrot.lane.b32.xlu0 %v751_v56, %s1024_s22  ;;  %v601_v1 = vadd.f32 %v600_v59, %v1142_v52  ;;  %v672_v5 = vadd.f32 %v671_v61, %v1142_v52 }
  0xf7   : > { %v752_v62 = vmax.f32 %v599_v57, 0.0  ;;  %v754_v63 = vmax.f32 %v670_v60, 0.0 }
  0xf8   : > { %v740_v0 = vpop.f32.mrb[6].mxu0  ;;  %v753_v3 = vmax.f32 %v601_v1, 0.0  ;;  %v755_v9 = vmax.f32 %v672_v5, 0.0 }
  0xf9   : > { %807 = vrot.lane.b32.xlu1 %v752_v62, %s1024_s22  ;;  %v951_v2 = vpop.f32.mrb[7].mxu0  ;;  %v741_v4 = vadd.f32 %v740_v0, %v1142_v52 }
  0xfa   : > { %829 = vrot.lane.b32.xlu0 %v754_v63, %s1025_s23 }
  0xfb   : > { %v756_v7 = vmax.f32 %v741_v4, 0.0 }
  0xfd   : > { %820 = vrot.lane.b32.xlu1 %v754_v63, %s1026_s24 }
  0xfe   : > { %818 = vrot.lane.b32.xlu0 %v753_v3, %s1026_s24 }
 0x101   : > { %809 = vrot.lane.b32.xlu1 %v753_v3, %s1024_s22 }
 0x102   : > { %833 = vrot.lane.b32.xlu0 %v756_v7, %s1025_s23 }
 0x105   : > { %831 = vrot.lane.b32.xlu1 %v755_v9, %s1025_s23 }
 0x106   : > { %762 = vrot.lane.b32.xlu0 %v746_v10, %s1024_s22 }
 0x109   : > { %760 = vrot.lane.b32.xlu1 %v745_v12, %s1024_s22 }
 0x10a   : > { %774 = vrot.lane.b32.xlu0 %v747_v13, %s1026_s24 }
 0x10d   : > { %764 = vrot.lane.b32.xlu1 %v747_v13, %s1024_s22 }
 0x10e   : > { %786 = vrot.lane.b32.xlu0 %v748_v15, %s1025_s23 }
 0x111   : > { %776 = vrot.lane.b32.xlu1 %v748_v15, %s1026_s24 }
 0x112   : > { %790 = vrot.lane.b32.xlu0 %v750_v18, %s1025_s23 }
 0x115   : > { %788 = vrot.lane.b32.xlu1 %v749_v19, %s1025_s23 }
 0x168   : > { %v806_v20 = vpop.permute.xlu0 %805 }
 0x16b   : > { %v808_v21 = vpop.permute.xlu1 %807 }
 0x16c   : > { %v830_v22 = vpop.permute.xlu0 %829  ;;  %v811_v25 = vsel %vm766_vm5, %v806_v20, %v808_v21 }
 0x16d   : > { %v815_v29 = vmax.f32 %v750_v18, %v811_v25 }
 0x16f   : > { %v821_v23 = vpop.permute.xlu1 %820 }
 0x170   : > { %v819_v24 = vpop.permute.xlu0 %818 }
 0x171   : > { %v822_v27 = vsel %vm778_vm6, %v819_v24, %v821_v23 }
 0x172   : > { %v825_v32 = vmax.f32 %v815_v29, %v822_v27 }
 0x173   : > { %v810_v26 = vpop.permute.xlu1 %809 }
 0x174   : > { %v812_v28 = vsel %vm766_vm5, %v808_v21, %v810_v26  ;;  %v834_v31 = vpop.permute.xlu0 %833 }
 0x175   : > { %v816_v30 = vmax.f32 %v751_v56, %v812_v28 }
 0x177   : > { %v826_v33 = vmax.f32 %v816_v30, %v821_v23  ;;  %v832_v34 = vpop.permute.xlu1 %831 }
 0x178   : > { %v835_v35 = vsel %vm792_vm7, %v830_v22, %v832_v34  ;;  %v836_v36 = vsel %vm792_vm7, %v832_v34, %v834_v31  ;;  %v763_v39 = vpop.permute.xlu0 %762 }
 0x179   : > { %v839_v37 = vmax.f32 %v825_v32, %v835_v35  ;;  %v840_v38 = vmax.f32 %v826_v33, %v836_v36 }
 0x17b   : > { %845 = vrot.lane.b32.xlu0 %v840_v38, %s1027_s25  ;;  %843 = vrot.lane.b32.xlu1 %v839_v37, %s1027_s25  ;;  %v761_v40 = vpop.permute.xlu1 %760 }
 0x17c   : > { %v775_v41 = vpop.permute.xlu0 %774  ;;  %v767_v47 = vsel %vm766_vm5, %v761_v40, %v763_v39 }
 0x17d   : > { %v771_v53 = vmax.f32 %v744_v48, %v767_v47 }
 0x17f   : > { %v765_v43 = vpop.permute.xlu1 %764 }
 0x180   : > { %v768_v44 = vsel %vm766_vm5, %v763_v39, %v765_v43  ;;  %v787_v46 = vpop.permute.xlu0 %786 }
 0x181   : > { %v772_v49 = vmax.f32 %v745_v12, %v768_v44 }
 0x183   : > { %v777_v50 = vpop.permute.xlu1 %776 }
 0x184   : > { %v779_v51 = vsel %vm778_vm6, %v775_v41, %v777_v50  ;;  %v783_v55 = vmax.f32 %v772_v49, %v777_v50  ;;  %v791_v56 = vpop.permute.xlu0 %790 }
 0x185   : > { %v782_v54 = vmax.f32 %v771_v53, %v779_v51 }
 0x187   : > { %v789_v57 = vpop.permute.xlu1 %788 }
 0x188   : > { %v793_v45 = vsel %vm792_vm7, %v787_v46, %v789_v57  ;;  %v794_v52 = vsel %vm792_vm7, %v789_v57, %v791_v56 }
 0x189   : > { %v797_v58 = vmax.f32 %v782_v54, %v793_v45  ;;  %v798_v59 = vmax.f32 %v783_v55, %v794_v52 }
 0x18b   : > { %799 = vst [vmem:[%s170_s29] sm:$0xff] %v797_v58  ;;  %801 = vst.msk [vmem:[%s170_s29 + $0x8] sm:$0xff] %vm800_vm8, %v798_v59 }
 0x1ed   : > { %v846_v60 = vpop.permute.xlu0 %845  ;;  %v844_v61 = vpop.permute.xlu1 %843 }
 0x1ee   : > { %938 = vst.msk [vmem:[%s170_s29 + $0x18] sm:$0xff] %vm800_vm8, %v846_v60  ;;  %v848_v62 = vsel %vm847_vm9, %v844_v61, %v846_v60 }
 0x1ef   : > { %937 = vst [vmem:[%s170_s29 + $0x10] sm:$0xff] %v848_v62 }
 0x1f0 PF: > { %s13_s12 = sadd.s32 1, %s1017_s12  }
 0x1f1   : > { %p10_p4 = scmp.ge.s32.totalorder %s13_s12, 4  }
 0x1f3   :  { %12 = sbr.rel (!%p10_p4) target bundleno = 1 (0x1), region = 63 }

// kernel: _lambda_.4
= control target key start
LH: loop header
LB: loop body
LE: loop exit
PB: predicated region body
PF: predicated region fallthrough
CT: control target
= control target key end

     0   :  { %s690_s12 = smov 0   ;;  %s822_s0 = inlined_call_operand.vmem [shape: f32[2,200,392], index: 0, kind: input, shape index: {}]   ;;  %s823_s1 = inlined_call_operand.vmem [shape: f32[8,200], index: 1, kind: input, shape index: {}]   ;;  %s824_s2 = inlined_call_operand.vmem [shape: f32[8,1], index: 2, kind: input, shape index: {}]   ;;  %s825_s3 = inlined_call_operand.vmem [shape: f32[2,2,8,49], index: 3, kind: output, shape index: {}]  }
   0x1 LB: > { %s532_s13 = sadd.s32 4294967295, %s663_s12   ;;  %p536_p0 = scmp.ge.s32.totalorder %s663_s12, 1  ;;  %s663_s12 = sphi %s690_s12, %s13_s12  }
   0x2   : > { %p137_p1 = scmp.lt.s32.totalorder %s663_s12, 3 }
   0x4   : > { %p138_p2 = pnand %p536_p0, %p137_p1 }
   0x5   : > { %p161_p3 = scmp.lt.s32.totalorder (!%p138_p2), %s532_s13, 1  ;;  %v172_v0 = vld [vmem:[%s823_s1 + $0x8] sm:$0xff] (!%p138_p2)  ;;  %vm279_vm0 = vcmask (!%p138_p2), 588800   ;;  %v273_v1 = vld [vmem:[%s824_s2] sm:$0xff] (!%p138_p2)  ;;  %v665_v2 = vmov (!%p138_p2), 0   ;;  %s666_s24 = smov (!%p138_p2), 79  }
   0x6   : > { %141 = sbr.rel (%p138_p2) target bundleno = 530 (0x212), region = 32  ;;  %540 = vmatprep.mubr.msk.f32.mxu0 (!%p138_p2), %vm279_vm0, %v172_v0  ;;  %541 = vmatprep.mubr.msk.f32.mxu1 (!%p138_p2), %vm279_vm0, %v172_v0  ;;  %s667_s25 = smov (!%p138_p2), 30   ;;  %vm454_vm1 = vcmask (!%p138_p2), 646144   ;;  %vm467_vm2 = vcmask (!%p138_p2), 891904   ;;  %vm439_vm3 = vcmask (!%p138_p2), 244736   ;;  %vm447_vm4 = vcmask (!%p138_p2), 400384  }
   0x7   : > { %656 = vset.pattern.permute.xlu0 (!%p138_p2), %v665_v2  ;;  %s668_s26 = smov (!%p138_p2), 109   ;;  %s669_s27 = smov (!%p138_p2), 60  }
   0x8   : > { %276 = vperm.xlu0 (!%p138_p2), %656, %v273_v1  }
   0xd   : > { %s827_s13 = smov (!%p161_p3, %s532_s13), 1 }
   0xe   : > { %s642_s18 = smul.u32 800, %s827_s13  ;;  %s545_s28 = sshll.u32 %s827_s13, 4 }
   0xf   : > { %s170_s4 = scalar_lea.vmem %s825_s3, %s545_s28 }
  0x10   : > { %s710_s21 = scalar_lea.vmem %s822_s0, %s642_s18 }
  0x11   : > { %v174_v3 = vld [vmem:[%s710_s21 + $0x8] sm:$0xff]  ;;  %v176_v5 = vld [vmem:[%s710_s21 + $0x18] sm:$0xff]  ;;  %v173_v8 = vld [vmem:[%s710_s21] sm:$0xff] }
  0x12   : > { %v178_v4 = vld [vmem:[%s710_s21 + $0x28] sm:$0xff]  ;;  %v180_v7 = vld [vmem:[%s710_s21 + $0x38] sm:$0xff]  ;;  %v177_v9 = vld [vmem:[%s710_s21 + $0x20] sm:$0xff] }
  0x13   : > { %v546_v6 = vpack.c.bf16 %v178_v4, %v174_v3  ;;  %v594_v10 = vpack.c.bf16 %v180_v7, %v176_v5  ;;  %v548_v11 = vpack.c.bf16 %v177_v9, %v173_v8  ;;  %v175_v12 = vld [vmem:[%s710_s21 + $0x10] sm:$0xff]  ;;  %v182_v14 = vld [vmem:[%s710_s21 + $0x48] sm:$0xff]  ;;  %v184_v17 = vld [vmem:[%s710_s21 + $0x58] sm:$0xff] }
  0x14   : > { %v179_v13 = vld [vmem:[%s710_s21 + $0x30] sm:$0xff]  ;;  %v186_v16 = vld [vmem:[%s710_s21 + $0x68] sm:$0xff]  ;;  %v188_v18 = vld [vmem:[%s710_s21 + $0x78] sm:$0xff] }
  0x15   : > { %547 = vmatprep.subr.bf16.mxu0 %v546_v6  ;;  %v596_v15 = vpack.c.bf16 %v179_v13, %v175_v12  ;;  %595 = vmatprep.subr.bf16.mxu1 %v594_v10  ;;  %v550_v19 = vpack.c.bf16 %v186_v16, %v182_v14  ;;  %v598_v20 = vpack.c.bf16 %v188_v18, %v184_v17  ;;  %v181_v21 = vld [vmem:[%s710_s21 + $0x40] sm:$0xff]  ;;  %v183_v23 = vld [vmem:[%s710_s21 + $0x50] sm:$0xff]  ;;  %v190_v26 = vld [vmem:[%s710_s21 + $0x88] sm:$0xff] }
  0x16   : > { %549 = vmatpush1.bf16.msra.mxu0 %v548_v11  ;;  %v185_v22 = vld [vmem:[%s710_s21 + $0x60] sm:$0xff]  ;;  %v187_v25 = vld [vmem:[%s710_s21 + $0x70] sm:$0xff]  ;;  %v194_v27 = vld [vmem:[%s710_s21 + $0xa8] sm:$0xff] }
  0x17   : > { %597 = vmatpush1.bf16.msra.mxu1 %v596_v15  ;;  %v552_v24 = vpack.c.bf16 %v185_v22, %v181_v21  ;;  %551 = vmatprep.subr.bf16.mxu0 %v550_v19  ;;  %v600_v28 = vpack.c.bf16 %v187_v25, %v183_v23  ;;  %v554_v29 = vpack.c.bf16 %v194_v27, %v190_v26  ;;  %v192_v30 = vld [vmem:[%s710_s21 + $0x98] sm:$0xff]  ;;  %v189_v32 = vld [vmem:[%s710_s21 + $0x80] sm:$0xff]  ;;  %v191_v35 = vld [vmem:[%s710_s21 + $0x90] sm:$0xff] }
  0x18   : > { %599 = vmatprep.subr.bf16.mxu1 %v598_v20  ;;  %v196_v31 = vld [vmem:[%s710_s21 + $0xb8] sm:$0xff]  ;;  %v193_v34 = vld [vmem:[%s710_s21 + $0xa0] sm:$0xff]  ;;  %v195_v36 = vld [vmem:[%s710_s21 + $0xb0] sm:$0xff] }
  0x19   : > { %v602_v33 = vpack.c.bf16 %v196_v31, %v192_v30  ;;  %v556_v37 = vpack.c.bf16 %v193_v34, %v189_v32  ;;  %v198_v38 = vld [vmem:[%s710_s21 + $0xc8] sm:$0xff]  ;;  %v200_v40 = vld [vmem:[%s710_s21 + $0xd8] sm:$0xff]  ;;  %v604_v41 = vpack.c.bf16 %v195_v36, %v191_v35  ;;  %v197_v44 = vld [vmem:[%s710_s21 + $0xc0] sm:$0xff] }
  0x1a   : > { %553 = vmatpush1.bf16.msra.mxu0 %v552_v24  ;;  %v202_v39 = vld [vmem:[%s710_s21 + $0xe8] sm:$0xff]  ;;  %v204_v43 = vld [vmem:[%s710_s21 + $0xf8] sm:$0xff]  ;;  %v201_v45 = vld [vmem:[%s710_s21 + $0xe0] sm:$0xff] }
  0x1b   : > { %601 = vmatpush1.bf16.msra.mxu1 %v600_v28  ;;  %555 = vmatprep.subr.bf16.mxu0 %v554_v29  ;;  %v558_v42 = vpack.c.bf16 %v202_v39, %v198_v38  ;;  %v606_v46 = vpack.c.bf16 %v204_v43, %v200_v40  ;;  %v199_v47 = vld [vmem:[%s710_s21 + $0xd0] sm:$0xff]  ;;  %v206_v49 = vld [vmem:[%s710_s21 + $0x108] sm:$0xff]  ;;  %v208_v51 = vld [vmem:[%s710_s21 + $0x118] sm:$0xff]  ;;  %v560_v53 = vpack.c.bf16 %v201_v45, %v197_v44 }
  0x1c   : > { %603 = vmatprep.subr.bf16.mxu1 %v602_v33  ;;  %v203_v48 = vld [vmem:[%s710_s21 + $0xf0] sm:$0xff]  ;;  %v210_v50 = vld [vmem:[%s710_s21 + $0x128] sm:$0xff]  ;;  %v212_v52 = vld [vmem:[%s710_s21 + $0x138] sm:$0xff] }
  0x1d   : > { %v608_v54 = vpack.c.bf16 %v203_v48, %v199_v47  ;;  %v562_v55 = vpack.c.bf16 %v210_v50, %v206_v49  ;;  %v205_v56 = vld [vmem:[%s710_s21 + $0x100] sm:$0xff]  ;;  %v207_v58 = vld [vmem:[%s710_s21 + $0x110] sm:$0xff]  ;;  %v610_v59 = vpack.c.bf16 %v212_v52, %v208_v51  ;;  %v214_v61 = vld [vmem:[%s710_s21 + $0x148] sm:$0xff] }
  0x1e   : > { %557 = vmatpush1.bf16.msra.mxu0 %v556_v37  ;;  %v209_v57 = vld [vmem:[%s710_s21 + $0x120] sm:$0xff]  ;;  %v211_v60 = vld [vmem:[%s710_s21 + $0x130] sm:$0xff]  ;;  %v218_v62 = vld [vmem:[%s710_s21 + $0x168] sm:$0xff] }
  0x1f   : > { %605 = vmatpush1.bf16.msra.mxu1 %v604_v41  ;;  %559 = vmatprep.subr.bf16.mxu0 %v558_v42  ;;  %v216_v63 = vld [vmem:[%s710_s21 + $0x158] sm:$0xff]  ;;  %v564_v1 = vpack.c.bf16 %v209_v57, %v205_v56  ;;  %v612_v2 = vpack.c.bf16 %v211_v60, %v207_v58  ;;  %v566_v3 = vpack.c.bf16 %v218_v62, %v214_v61  ;;  %v213_v4 = vld [vmem:[%s710_s21 + $0x140] sm:$0xff]  ;;  %v215_v6 = vld [vmem:[%s710_s21 + $0x150] sm:$0xff] }
  0x20   : > { %607 = vmatprep.subr.bf16.mxu1 %v606_v46  ;;  %v220_v0 = vld [vmem:[%s710_s21 + $0x178] sm:$0xff]  ;;  %v217_v5 = vld [vmem:[%s710_s21 + $0x160] sm:$0xff]  ;;  %v219_v8 = vld [vmem:[%s710_s21 + $0x170] sm:$0xff] }
  0x21   : > { %v614_v7 = vpack.c.bf16 %v220_v0, %v216_v63  ;;  %v222_v9 = vld [vmem:[%s710_s21 + $0x188] sm:$0xff]  ;;  %v224_v11 = vld [vmem:[%s710_s21 + $0x198] sm:$0xff]  ;;  %v568_v13 = vpack.c.bf16 %v217_v5, %v213_v4  ;;  %v616_v14 = vpack.c.bf16 %v219_v8, %v215_v6  ;;  %v221_v16 = vld [vmem:[%s710_s21 + $0x180] sm:$0xff] }
  0x22   : > { %561 = vmatpush1.bf16.msra.mxu0 %v560_v53  ;;  %v226_v10 = vld [vmem:[%s710_s21 + $0x1a8] sm:$0xff]  ;;  %v228_v12 = vld [vmem:[%s710_s21 + $0x1b8] sm:$0xff]  ;;  %v225_v17 = vld [vmem:[%s710_s21 + $0x1a0] sm:$0xff] }
  0x23   : > { %609 = vmatpush1.bf16.msra.mxu1 %v608_v54  ;;  %563 = vmatprep.subr.bf16.mxu0 %v562_v55  ;;  %v570_v15 = vpack.c.bf16 %v226_v10, %v222_v9  ;;  %v223_v18 = vld [vmem:[%s710_s21 + $0x190] sm:$0xff]  ;;  %v618_v19 = vpack.c.bf16 %v228_v12, %v224_v11  ;;  %v230_v21 = vld [vmem:[%s710_s21 + $0x1c8] sm:$0xff]  ;;  %v232_v23 = vld [vmem:[%s710_s21 + $0x1d8] sm:$0xff]  ;;  %v572_v25 = vpack.c.bf16 %v225_v17, %v221_v16 }
  0x24   : > { %611 = vmatprep.subr.bf16.mxu1 %v610_v59  ;;  %v227_v20 = vld [vmem:[%s710_s21 + $0x1b0] sm:$0xff]  ;;  %v234_v22 = vld [vmem:[%s710_s21 + $0x1e8] sm:$0xff]  ;;  %v236_v24 = vld [vmem:[%s710_s21 + $0x1f8] sm:$0xff] }
  0x25   : > { %v620_v26 = vpack.c.bf16 %v227_v20, %v223_v18  ;;  %v574_v27 = vpack.c.bf16 %v234_v22, %v230_v21  ;;  %v229_v28 = vld [vmem:[%s710_s21 + $0x1c0] sm:$0xff]  ;;  %v231_v30 = vld [vmem:[%s710_s21 + $0x1d0] sm:$0xff]  ;;  %v622_v31 = vpack.c.bf16 %v236_v24, %v232_v23  ;;  %v238_v33 = vld [vmem:[%s710_s21 + $0x208] sm:$0xff] }
  0x26   : > { %565 = vmatpush1.bf16.msra.mxu0 %v564_v1  ;;  %v233_v29 = vld [vmem:[%s710_s21 + $0x1e0] sm:$0xff]  ;;  %v235_v32 = vld [vmem:[%s710_s21 + $0x1f0] sm:$0xff]  ;;  %v242_v34 = vld [vmem:[%s710_s21 + $0x228] sm:$0xff] }
  0x27   : > { %613 = vmatpush1.bf16.msra.mxu1 %v612_v2  ;;  %567 = vmatprep.subr.bf16.mxu0 %v566_v3  ;;  %v240_v35 = vld [vmem:[%s710_s21 + $0x218] sm:$0xff]  ;;  %v576_v37 = vpack.c.bf16 %v233_v29, %v229_v28  ;;  %v624_v38 = vpack.c.bf16 %v235_v32, %v231_v30  ;;  %v578_v39 = vpack.c.bf16 %v242_v34, %v238_v33  ;;  %v237_v40 = vld [vmem:[%s710_s21 + $0x200] sm:$0xff]  ;;  %v239_v42 = vld [vmem:[%s710_s21 + $0x210] sm:$0xff] }
  0x28   : > { %615 = vmatprep.subr.bf16.mxu1 %v614_v7  ;;  %v244_v36 = vld [vmem:[%s710_s21 + $0x238] sm:$0xff]  ;;  %v241_v41 = vld [vmem:[%s710_s21 + $0x220] sm:$0xff]  ;;  %v243_v44 = vld [vmem:[%s710_s21 + $0x230] sm:$0xff] }
  0x29   : > { %v626_v43 = vpack.c.bf16 %v244_v36, %v240_v35  ;;  %v246_v45 = vld [vmem:[%s710_s21 + $0x248] sm:$0xff]  ;;  %v248_v47 = vld [vmem:[%s710_s21 + $0x258] sm:$0xff]  ;;  %v580_v49 = vpack.c.bf16 %v241_v41, %v237_v40  ;;  %v628_v50 = vpack.c.bf16 %v243_v44, %v239_v42  ;;  %v245_v52 = vld [vmem:[%s710_s21 + $0x240] sm:$0xff] }
  0x2a   : > { %569 = vmatpush1.bf16.msra.mxu0 %v568_v13  ;;  %v250_v46 = vld [vmem:[%s710_s21 + $0x268] sm:$0xff]  ;;  %v252_v48 = vld [vmem:[%s710_s21 + $0x278] sm:$0xff]  ;;  %v249_v53 = vld [vmem:[%s710_s21 + $0x260] sm:$0xff] }
  0x2b   : > { %617 = vmatpush1.bf16.msra.mxu1 %v616_v14  ;;  %571 = vmatprep.subr.bf16.mxu0 %v570_v15  ;;  %v582_v51 = vpack.c.bf16 %v250_v46, %v246_v45  ;;  %v247_v54 = vld [vmem:[%s710_s21 + $0x250] sm:$0xff]  ;;  %v630_v55 = vpack.c.bf16 %v252_v48, %v248_v47  ;;  %v254_v57 = vld [vmem:[%s710_s21 + $0x288] sm:$0xff]  ;;  %v256_v59 = vld [vmem:[%s710_s21 + $0x298] sm:$0xff]  ;;  %v584_v61 = vpack.c.bf16 %v249_v53, %v245_v52 }
  0x2c   : > { %619 = vmatprep.subr.bf16.mxu1 %v618_v19  ;;  %v251_v56 = vld [vmem:[%s710_s21 + $0x270] sm:$0xff]  ;;  %v258_v58 = vld [vmem:[%s710_s21 + $0x2a8] sm:$0xff]  ;;  %v260_v60 = vld [vmem:[%s710_s21 + $0x2b8] sm:$0xff] }
  0x2d   : > { %v632_v62 = vpack.c.bf16 %v251_v56, %v247_v54  ;;  %v586_v63 = vpack.c.bf16 %v258_v58, %v254_v57  ;;  %v253_v0 = vld [vmem:[%s710_s21 + $0x280] sm:$0xff]  ;;  %v255_v2 = vld [vmem:[%s710_s21 + $0x290] sm:$0xff]  ;;  %v634_v3 = vpack.c.bf16 %v260_v60, %v256_v59  ;;  %v262_v5 = vld [vmem:[%s710_s21 + $0x2c8] sm:$0xff] }
  0x2e   : > { %573 = vmatpush1.bf16.msra.mxu0 %v572_v25  ;;  %v257_v1 = vld [vmem:[%s710_s21 + $0x2a0] sm:$0xff]  ;;  %v259_v4 = vld [vmem:[%s710_s21 + $0x2b0] sm:$0xff]  ;;  %v266_v6 = vld [vmem:[%s710_s21 + $0x2e8] sm:$0xff] }
  0x2f   : > { %621 = vmatpush1.bf16.msra.mxu1 %v620_v26  ;;  %575 = vmatprep.subr.bf16.mxu0 %v574_v27  ;;  %v264_v7 = vld [vmem:[%s710_s21 + $0x2d8] sm:$0xff]  ;;  %v588_v9 = vpack.c.bf16 %v257_v1, %v253_v0  ;;  %v636_v10 = vpack.c.bf16 %v259_v4, %v255_v2  ;;  %v590_v11 = vpack.c.bf16 %v266_v6, %v262_v5  ;;  %v261_v12 = vld [vmem:[%s710_s21 + $0x2c0] sm:$0xff]  ;;  %v263_v15 = vld [vmem:[%s710_s21 + $0x2d0] sm:$0xff] }
  0x30   : > { %623 = vmatprep.subr.bf16.mxu1 %v622_v31  ;;  %v268_v8 = vld [vmem:[%s710_s21 + $0x2f8] sm:$0xff]  ;;  %v265_v13 = vld [vmem:[%s710_s21 + $0x2e0] sm:$0xff]  ;;  %v267_v16 = vld [vmem:[%s710_s21 + $0x2f0] sm:$0xff] }
  0x31   : > { %v638_v14 = vpack.c.bf16 %v268_v8, %v264_v7  ;;  %v592_v17 = vpack.c.bf16 %v265_v13, %v261_v12  ;;  %v640_v18 = vpack.c.bf16 %v267_v16, %v263_v15  ;;  %v270_v19 = vld [vmem:[%s710_s21 + $0x308] sm:$0xff]  ;;  %v272_v20 = vld [vmem:[%s710_s21 + $0x318] sm:$0xff]  ;;  %v269_v21 = vld [vmem:[%s710_s21 + $0x300] sm:$0xff] }
  0x32   : > { %577 = vmatpush1.bf16.msra.mxu0 %v576_v37  ;;  %v271_v22 = vld [vmem:[%s710_s21 + $0x310] sm:$0xff]  ;;  %v171_v23 = vld [vmem:[%s823_s1] sm:$0xff] }
  0x33   : > { %625 = vmatpush1.bf16.msra.mxu1 %v624_v38  ;;  %579 = vmatprep.subr.bf16.mxu0 %v578_v39 }
  0x34   : > { %627 = vmatprep.subr.bf16.mxu1 %v626_v43 }
  0x36   : > { %581 = vmatpush1.bf16.msra.mxu0 %v580_v49 }
  0x37   : > { %629 = vmatpush1.bf16.msra.mxu1 %v628_v50  ;;  %583 = vmatprep.subr.bf16.mxu0 %v582_v51 }
  0x38   : > { %631 = vmatprep.subr.bf16.mxu1 %v630_v55 }
  0x3a   : > { %585 = vmatpush1.bf16.msra.mxu0 %v584_v61 }
  0x3b   : > { %633 = vmatpush1.bf16.msra.mxu1 %v632_v62  ;;  %587 = vmatprep.subr.bf16.mxu0 %v586_v63 }
  0x3c   : > { %635 = vmatprep.subr.bf16.mxu1 %v634_v3 }
  0x3e   : > { %589 = vmatpush1.bf16.msra.mxu0 %v588_v9 }
  0x3f   : > { %637 = vmatpush1.bf16.msra.mxu1 %v636_v10  ;;  %591 = vmatprep.subr.bf16.mxu0 %v590_v11 }
  0x40   : > { %639 = vmatprep.subr.bf16.mxu1 %v638_v14 }
  0x42   : > { %593 = vmatpush1.bf16.msra.mxu0 %v592_v17 }
  0x43   : > { %641 = vmatpush1.bf16.msra.mxu1 %v640_v18  ;;  %331 = vmatprep.subr.mxu0 %v270_v19 }
  0x44   : > { %402 = vmatprep.subr.mxu1 %v272_v20 }
  0x46   : > { %332 = vmatpush1.msra.mxu0 %v269_v21 }
  0x47   : > { %403 = vmatpush1.msra.mxu1 %v271_v22  ;;  %348 = vmatmul.mubr.f32.vlgmr.msra.gmra.mrb[0].mxu0 %v171_v23 }
  0x48   : > { %419 = vmatmul.mubr.f32.vlgmr.msra.gmra.mrb[0].mxu1 %v171_v23 }
  0x87   : > { %v277_v24 = vpop.permute.xlu0 %276 }
 0x11a   : > { %v349_v25 = vpop.f32.mrb[0].mxu0 }
 0x11b   : > { %v420_v26 = vpop.f32.mrb[0].mxu1  ;;  %v351_v27 = vpop.f32.mrb[1].mxu0  ;;  %v350_v33 = vadd.f32 %v349_v25, %v277_v24 }
 0x11c   : > { %v421_v28 = vadd.f32 %v420_v26, %v277_v24  ;;  %v352_v29 = vadd.f32 %v351_v27, %v277_v24  ;;  %v422_v30 = vpop.f32.mrb[1].mxu1 }
 0x11d   : > { %v423_v34 = vadd.f32 %v422_v30, %v277_v24  ;;  %v425_v35 = vmax.f32 %v350_v33, 0.0 }
 0x11e   : > { %v427_v31 = vmax.f32 %v421_v28, 0.0  ;;  %v426_v32 = vmax.f32 %v352_v29, 0.0 }
 0x11f   : > { %v428_v36 = vmax.f32 %v423_v34, 0.0 }
 0x120   : > { %452 = vrot.lane.b32.xlu1 %v427_v31, %s666_s24  ;;  %450 = vrot.lane.b32.xlu0 %v426_v32, %s666_s24 }
 0x124   : > { %458 = vrot.lane.b32.xlu1 %v427_v31, %s667_s25  ;;  %463 = vrot.lane.b32.xlu0 %v427_v31, %s668_s26 }
 0x128   : > { %465 = vrot.lane.b32.xlu1 %v428_v36, %s668_s26  ;;  %430 = vrot.lane.b32.xlu0 %v425_v35, %s666_s24 }
 0x12c   : > { %435 = vrot.lane.b32.xlu1 %v425_v35, %s667_s25  ;;  %437 = vrot.lane.b32.xlu0 %v426_v32, %s667_s25 }
 0x130   : > { %443 = vrot.lane.b32.xlu1 %v426_v32, %s668_s26 }
 0x192   : > { %v453_v37 = vpop.permute.xlu1 %452  ;;  %v451_v38 = vpop.permute.xlu0 %450 }
 0x193   : > { %v455_v39 = vsel %vm454_vm1, %v451_v38, %v453_v37 }
 0x194   : > { %v457_v41 = vmax.f32 %v426_v32, %v455_v39 }
 0x196   : > { %v459_v40 = vpop.permute.xlu1 %458  ;;  %v464_v42 = vpop.permute.xlu0 %463 }
 0x197   : > { %v461_v43 = vmax.f32 %v457_v41, %v459_v40 }
 0x19a   : > { %v466_v44 = vpop.permute.xlu1 %465  ;;  %v431_v45 = vpop.permute.xlu0 %430 }
 0x19b   : > { %v468_v46 = vsel %vm467_vm2, %v464_v42, %v466_v44  ;;  %v433_v48 = vmax.f32 %v425_v35, %v431_v45 }
 0x19c   : > { %v470_v47 = vmax.f32 %v461_v43, %v468_v46 }
 0x19e   : > { %v436_v49 = vpop.permute.xlu1 %435  ;;  %472 = vrot.lane.b32.xlu0 %v470_v47, %s669_s27  ;;  %v438_v50 = vpop.permute.xlu0 %437 }
 0x19f   : > { %v440_v51 = vsel %vm439_vm3, %v436_v49, %v438_v50 }
 0x1a0   : > { %v442_v52 = vmax.f32 %v433_v48, %v440_v51 }
 0x1a2   : > { %v444_v53 = vpop.permute.xlu1 %443 }
 0x1a3   : > { %v446_v54 = vmax.f32 %v442_v52, %v444_v53 }
 0x1a5   : > { %448 = vst.msk [vmem:[%s170_s4] sm:$0xff] %vm447_vm4, %v446_v54 }
 0x210   : > { %v473_v55 = vpop.permute.xlu0 %472 }
 0x211   : > { %542 = vst.msk [vmem:[%s170_s4 + $0x8] sm:$0xff] %vm447_vm4, %v473_v55 }
 0x212 PF: > { %s13_s12 = sadd.s32 1, %s663_s12  }
 0x213   : > { %p10_p4 = scmp.ge.s32.totalorder %s13_s12, 4  }
 0x215   :  { %12 = sbr.rel (!%p10_p4) target bundleno = 1 (0x1), region = 63 }

// kernel: _lambda_.5
= control target key start
LH: loop header
LB: loop body
LE: loop exit
PB: predicated region body
PF: predicated region fallthrough
CT: control target
= control target key end

     0   :  { %s592_s12 = smov 0   ;;  %s782_s0 = inlined_call_operand.vmem [shape: f32[2,2,392], index: 0, kind: input, shape index: {}]   ;;  %s783_s1 = inlined_call_operand.vmem [shape: f32[392,128], index: 1, kind: input, shape index: {}]   ;;  %s784_s2 = inlined_call_operand.vmem [shape: f32[1,128], index: 2, kind: input, shape index: {}]   ;;  %s785_s3 = inlined_call_operand.vmem [shape: f32[2,2,128], index: 3, kind: output, shape index: {}]  }
   0x1 LB: > { %s445_s13 = sadd.s32 4294967295, %s567_s12   ;;  %p449_p0 = scmp.ge.s32.totalorder %s567_s12, 1  ;;  %s567_s12 = sphi %s592_s12, %s13_s12  }
   0x2   : > { %p137_p1 = scmp.lt.s32.totalorder %s567_s12, 3 }
   0x4   : > { %p138_p2 = pnand %p449_p0, %p137_p1 }
   0x5   : > { %v186_v0 = vld [vmem:[%s783_s1 + $0x80] sm:$0xff] (!%p138_p2)  ;;  %v187_v1 = vld [vmem:[%s783_s1 + $0x88] sm:$0xff] (!%p138_p2)  ;;  %v569_v5 = vmov (!%p138_p2), 0.0|0.0   ;;  %p621_p3 = scmp.lt.s32.totalorder (!%p138_p2), %s445_s13, 1  ;;  %v188_v10 = vld [vmem:[%s783_s1 + $0x90] sm:$0xff] (!%p138_p2)  ;;  %v231_v24 = vlaneseq (!%p138_p2)  ;;  %vm247_vm0 = vcmask (!%p138_p2), 64512  }
   0x6   : > { %141 = sbr.rel (%p138_p2) target bundleno = 262 (0x106), region = 32  ;;  %v170_v2 = vld [vmem:[%s783_s1] sm:$0xff] (!%p138_p2)  ;;  %v493_v3 = vpack.c.bf16 (!%p138_p2), %v187_v1, %v186_v0  ;;  %v171_v4 = vld [vmem:[%s783_s1 + $0x8] sm:$0xff] (!%p138_p2)  ;;  %525 = vmatprep.subr.bf16.mxu1 (!%p138_p2), %v569_v5  ;;  %v189_v11 = vld [vmem:[%s783_s1 + $0x98] sm:$0xff] (!%p138_p2)  ;;  %v570_v22 = vmov (!%p138_p2), 1983009808  }
   0x7   : > { %v202_v6 = vld [vmem:[%s783_s1 + $0x100] sm:$0xff] (!%p138_p2)  ;;  %v203_v7 = vld [vmem:[%s783_s1 + $0x108] sm:$0xff] (!%p138_p2)  ;;  %v495_v8 = vpack.c.bf16 (!%p138_p2), %v171_v4, %v170_v2  ;;  %v172_v12 = vld [vmem:[%s783_s1 + $0x10] sm:$0xff] (!%p138_p2)  ;;  %v497_v13 = vpack.c.bf16 (!%p138_p2), %v189_v11, %v188_v10  ;;  %v229_v23 = vunpack.c.l.s4 (!%p138_p2), %v570_v22  ;;  %v232_v35 = vshrl.u32 (!%p138_p2), %v231_v24, 7 }
   0x8   : > { %v526_v9 = vpack.c.bf16 (!%p138_p2), %v203_v7, %v202_v6  ;;  %494 = vmatprep.subr.bf16.mxu0 (!%p138_p2), %v493_v3  ;;  %v173_v14 = vld [vmem:[%s783_s1 + $0x18] sm:$0xff] (!%p138_p2)  ;;  %v204_v15 = vld [vmem:[%s783_s1 + $0x110] sm:$0xff] (!%p138_p2)  ;;  %v190_v19 = vld [vmem:[%s783_s1 + $0xa0] sm:$0xff] (!%p138_p2)  ;;  %v571_v22 = vmov (!%p138_p2), 0.0  }
   0x9   : > { %v205_v16 = vld [vmem:[%s783_s1 + $0x118] sm:$0xff] (!%p138_p2)  ;;  %496 = vmatpush3.bf16.msra.mxu0 (!%p138_p2), %v495_v8  ;;  %v499_v17 = vpack.c.bf16 (!%p138_p2), %v173_v14, %v172_v12  ;;  %v191_v20 = vld [vmem:[%s783_s1 + $0xa8] sm:$0xff] (!%p138_p2)  ;;  %v174_v21 = vld [vmem:[%s783_s1 + $0x20] sm:$0xff] (!%p138_p2)  ;;  %v230_v34 = vunpack.c.0.s8 (!%p138_p2), %v229_v23 }
   0xa   : > { %527 = vmatpush1.bf16.msra.mxu1 (!%p138_p2), %v526_v9  ;;  %v529_v18 = vpack.c.bf16 (!%p138_p2), %v205_v16, %v204_v15  ;;  %498 = vmatprep.subr.bf16.mxu0 (!%p138_p2), %v497_v13  ;;  %v501_v25 = vpack.c.bf16 (!%p138_p2), %v191_v20, %v190_v19  ;;  %v175_v26 = vld [vmem:[%s783_s1 + $0x28] sm:$0xff] (!%p138_p2)  ;;  %v206_v27 = vld [vmem:[%s783_s1 + $0x120] sm:$0xff] (!%p138_p2)  ;;  %v192_v29 = vld [vmem:[%s783_s1 + $0xb0] sm:$0xff] (!%p138_p2) }
   0xb   : > { %528 = vmatprep.subr.bf16.mxu1 (!%p138_p2), %v569_v5  ;;  %v207_v28 = vld [vmem:[%s783_s1 + $0x128] sm:$0xff] (!%p138_p2)  ;;  %v193_v30 = vld [vmem:[%s783_s1 + $0xb8] sm:$0xff] (!%p138_p2)  ;;  %v503_v31 = vpack.c.bf16 (!%p138_p2), %v175_v26, %v174_v21  ;;  %v176_v33 = vld [vmem:[%s783_s1 + $0x30] sm:$0xff] (!%p138_p2)  ;;  %v233_v46 = vsub.s32 (!%p138_p2), %v230_v34, %v232_v35 }
   0xc   : > { %v532_v32 = vpack.c.bf16 (!%p138_p2), %v207_v28, %v206_v27  ;;  %v505_v36 = vpack.c.bf16 (!%p138_p2), %v193_v30, %v192_v29  ;;  %v177_v37 = vld [vmem:[%s783_s1 + $0x38] sm:$0xff] (!%p138_p2)  ;;  %v208_v38 = vld [vmem:[%s783_s1 + $0x130] sm:$0xff] (!%p138_p2)  ;;  %v194_v40 = vld [vmem:[%s783_s1 + $0xc0] sm:$0xff] (!%p138_p2) }
   0xd   : > { %s788_s13 = smov (!%p621_p3, %s445_s13), 1  ;;  %500 = vmatpush3.bf16.msra.mxu0 %v499_v17  ;;  %v209_v39 = vld [vmem:[%s783_s1 + $0x138] sm:$0xff]  ;;  %v195_v41 = vld [vmem:[%s783_s1 + $0xc8] sm:$0xff]  ;;  %v507_v42 = vpack.c.bf16 %v177_v37, %v176_v33  ;;  %v178_v44 = vld [vmem:[%s783_s1 + $0x40] sm:$0xff] }
   0xe   : > { %530 = vmatpush1.bf16.msra.mxu1 %v529_v18  ;;  %502 = vmatprep.subr.bf16.mxu0 %v501_v25  ;;  %s457_s11 = sshll.u32 %s788_s13, 3  ;;  %v535_v43 = vpack.c.bf16 %v209_v39, %v208_v38  ;;  %v179_v45 = vld [vmem:[%s783_s1 + $0x48] sm:$0xff]  ;;  %v509_v47 = vpack.c.bf16 %v195_v41, %v194_v40  ;;  %v210_v48 = vld [vmem:[%s783_s1 + $0x140] sm:$0xff]  ;;  %v196_v50 = vld [vmem:[%s783_s1 + $0xd0] sm:$0xff]  ;;  %s452_s19 = sshll.u32 %s788_s13, 1 }
   0xf   : > { %531 = vmatprep.subr.bf16.mxu1 %v569_v5  ;;  %s164_s24 = scalar_lea.vmem %s782_s0, %s457_s11  ;;  %v211_v49 = vld [vmem:[%s783_s1 + $0x148] sm:$0xff]  ;;  %v197_v51 = vld [vmem:[%s783_s1 + $0xd8] sm:$0xff]  ;;  %v511_v52 = vpack.c.bf16 %v179_v45, %v178_v44  ;;  %v180_v55 = vld [vmem:[%s783_s1 + $0x50] sm:$0xff]  ;;  %s168_s22 = scalar_lea.vmem %s785_s3, %s452_s19 }
  0x10   : > { %v169_v53 = vld [vmem:[%s164_s24] sm:$0xff]  ;;  %v538_v54 = vpack.c.bf16 %v211_v49, %v210_v48  ;;  %v513_v58 = vpack.c.bf16 %v197_v51, %v196_v50  ;;  %v181_v59 = vld [vmem:[%s783_s1 + $0x58] sm:$0xff]  ;;  %v212_v60 = vld [vmem:[%s783_s1 + $0x150] sm:$0xff] }
  0x11   : > { %504 = vmatpush3.bf16.msra.mxu0 %v503_v31  ;;  %v227_v56 = vcombine.high %v169_v53, %v169_v53  ;;  %v234_v57 = vrot.slane %v169_v53, %v233_v46  ;;  %v213_v61 = vld [vmem:[%s783_s1 + $0x158] sm:$0xff]  ;;  %v198_v62 = vld [vmem:[%s783_s1 + $0xe0] sm:$0xff]  ;;  %v199_v63 = vld [vmem:[%s783_s1 + $0xe8] sm:$0xff]  ;;  %v515_v2 = vpack.c.bf16 %v181_v59, %v180_v55 }
  0x12   : > { %533 = vmatpush1.bf16.msra.mxu1 %v532_v32  ;;  %506 = vmatprep.subr.bf16.mxu0 %v505_v36  ;;  %v541_v3 = vpack.c.bf16 %v213_v61, %v212_v60  ;;  %v182_v4 = vld [vmem:[%s783_s1 + $0x60] sm:$0xff]  ;;  %v517_v7 = vpack.c.bf16 %v199_v63, %v198_v62  ;;  %v183_v8 = vld [vmem:[%s783_s1 + $0x68] sm:$0xff]  ;;  %v200_v11 = vld [vmem:[%s783_s1 + $0xf0] sm:$0xff] }
  0x13   : > { %534 = vmatprep.subr.bf16.mxu1 %v569_v5  ;;  %v242_v0 = vcombine.high %v234_v57, %v234_v57  ;;  %v241_v1 = vrot.slane %v227_v56, %v233_v46  ;;  %v214_v9 = vld [vmem:[%s783_s1 + $0x160] sm:$0xff]  ;;  %v215_v10 = vld [vmem:[%s783_s1 + $0x168] sm:$0xff]  ;;  %v201_v12 = vld [vmem:[%s783_s1 + $0xf8] sm:$0xff]  ;;  %v519_v13 = vpack.c.bf16 %v183_v8, %v182_v4 }
  0x14   : > { %v544_v14 = vpack.c.bf16 %v215_v10, %v214_v9  ;;  %v184_v15 = vld [vmem:[%s783_s1 + $0x70] sm:$0xff]  ;;  %v521_v16 = vpack.c.bf16 %v201_v12, %v200_v11  ;;  %v185_v17 = vld [vmem:[%s783_s1 + $0x78] sm:$0xff]  ;;  %v218_v23 = vld [vmem:[%s783_s1 + $0x180] sm:$0xff] }
  0x15   : > { %508 = vmatpush3.bf16.msra.mxu0 %v507_v42  ;;  %v243_v6 = vcombine.high %v241_v1, %v241_v1  ;;  %314 = vmatprep.mubr.f32.mxu0 %v242_v0  ;;  %v216_v18 = vld [vmem:[%s783_s1 + $0x170] sm:$0xff]  ;;  %v217_v19 = vld [vmem:[%s783_s1 + $0x178] sm:$0xff]  ;;  %v523_v20 = vpack.c.bf16 %v185_v17, %v184_v15  ;;  %v453_v26 = vld [vmem:[%s784_s2] ss:$0 sm:$0xff] }
  0x16   : > { %536 = vmatpush1.bf16.msra.mxu1 %v535_v43  ;;  %510 = vmatprep.subr.bf16.mxu0 %v509_v47  ;;  %v547_v21 = vpack.c.bf16 %v217_v19, %v216_v18 }
  0x17   : > { %537 = vmatprep.subr.bf16.mxu1 %v569_v5  ;;  %454 = vmatprep.mubr.msk.f32.mxu1 %vm247_vm0, %v243_v6 }
  0x19   : > { %512 = vmatpush3.bf16.msra.mxu0 %v511_v52 }
  0x1a   : > { %539 = vmatpush1.bf16.msra.mxu1 %v538_v54  ;;  %514 = vmatprep.subr.bf16.mxu0 %v513_v58 }
  0x1b   : > { %540 = vmatprep.subr.bf16.mxu1 %v569_v5 }
  0x1d   : > { %516 = vmatpush3.bf16.msra.mxu0 %v515_v2 }
  0x1e   : > { %542 = vmatpush1.bf16.msra.mxu1 %v541_v3  ;;  %518 = vmatprep.subr.bf16.mxu0 %v517_v7 }
  0x1f   : > { %543 = vmatprep.subr.bf16.mxu1 %v569_v5 }
  0x21   : > { %520 = vmatpush3.bf16.msra.mxu0 %v519_v13 }
  0x22   : > { %545 = vmatpush1.bf16.msra.mxu1 %v544_v14  ;;  %522 = vmatprep.subr.bf16.mxu0 %v521_v16 }
  0x23   : > { %546 = vmatprep.subr.bf16.mxu1 %v569_v5 }
  0x25   : > { %524 = vmatpush3.bf16.msra.mxu0 %v523_v20 }
  0x26   : > { %548 = vmatpush1.bf16.msra.mxu1 %v547_v21 }
  0x27   : > { %352 = vmatprep.subr.mxu1 %v571_v22 }
  0x28   : > { %315 = vmatmul.mubr.f32.vlgmr.msra.gmra.mrb[0].mxu0 %v234_v57 }
  0x2a   : > { %353 = vmatpush1.msra.mxu1 %v218_v23 }
  0x2b   : > { %385 = vmatmul.mubr.f32.vlgmr.msra.gmra.mrb[0].mxu1 %v241_v1 }
  0xfb   : > { %v490_v24 = vpop.f32.mrb[0].mxu0 }
  0xfc   : > { %v491_v25 = vpop.f32.mrb[1].mxu0 }
  0xfd   : > { %v492_v27 = vadd.f32 %v491_v25, %v490_v24 }
  0xfe   : > { %v386_v28 = vpop.f32.mrb[0].mxu1 }
  0xff   : > { %v388_v5 = vpop.f32.mrb[1].mxu1  ;;  %v317_v29 = vadd.f32 %v492_v27, %v453_v26 }
 0x101   : > { %v387_v30 = vadd.f32 %v386_v28, %v317_v29 }
 0x103   : > { %v390_v31 = vmax.f32 %v387_v30, 0.0 }
 0x105   : > { %391 = vst [vmem:[%s168_s22] sm:$0x3] %v390_v31 }
 0x106 PF: > { %s13_s12 = sadd.s32 1, %s567_s12  }
 0x107   : > { %p10_p4 = scmp.ge.s32.totalorder %s13_s12, 4  }
 0x109   :  { %12 = sbr.rel (!%p10_p4) target bundleno = 1 (0x1), region = 62 }

</bundles_post_ra>
